<compile_context>
chip_gen: v6e
topology: v6e:2x2x1
jax: 0.10.0
libtpu: 0.0.40
codegen_flags: <defaults>
</compile_context>

<pallas_src>
import functools

import jax
import jax.numpy as jnp
from jax import lax
from jax.experimental import pallas as pl
from jax.experimental.pallas import tpu as pltpu

LANE = 128
SUBLANE = 8
ROW_ALIGN = 16                     # bf16-friendly (16x128 packing)
CHUNK_ROWS = 128                   # inner compute chunk; bounds vreg live ranges
MAX_TILE_ROWS = 4096
VMEM_INPUT_BUDGET = 8 * 1024 * 1024    # double-buffered input bytes per step
VMEM_LIMIT_BYTES = 32 * 1024 * 1024    # within physical VMEM on v5e/v6e/v7x


def _round_up(x, m):
    return ((x + m - 1) // m) * m


def _cdiv(a, b):
    return -(-a // b)


def _is_v7x():
    """Best-effort detection of a dual-TensorCore (v7x) chip."""
    try:
        kind = jax.devices()[0].device_kind.lower()
    except Exception:
        return False
    return ("v7" in kind) or ("7x" in kind) or ("tpu7" in kind)


def _ensemble_mse_kernel(*args, scaled_weights, tr, chunk, rows, steps, needs_mask):
    """One grid step: fold squared errors of a (tr, 128) tile into per-k accumulators.

    args = (pred_ref_0 ... pred_ref_{K-1}, labels_ref, out_ref, acc_ref)
      pred_ref_k : (tr, 128) VMEM tile of prediction k (native dtype)
      labels_ref : (tr, 128) VMEM tile of labels (native dtype)
      out_ref    : (1, 8, 128) per-core output block
      acc_ref    : (K, 8, 128) f32 VMEM scratch (raw SSE per prediction)
    `scaled_weights[k] = loss_weight[k] / N` is applied only at finalize.
    """
    k = len(scaled_weights)
    pred_refs = args[:k]
    labels_ref = args[k]
    out_ref = args[k + 1]
    acc_ref = args[k + 2]

    c = pl.program_id(0)          # core / parallel chunk
    i = pl.program_id(1)          # step along the reduction

    @pl.when(i == 0)
    def _init():
        acc_ref[...] = jnp.zeros_like(acc_ref)

    n_chunks = tr // chunk

    def accumulate(valid):
        # valid: None -> every row of this tile is in range (steady state);
        #        otherwise a dynamic scalar count of valid rows in this tile.
        if valid is not None:
            row_ids = lax.broadcasted_iota(jnp.int32, (chunk, LANE), 0)

        def body(ci, parts):
            r0 = pl.multiple_of(ci * chunk, chunk)
            lab = labels_ref[pl.ds(r0, chunk), :].astype(jnp.float32)
            new_parts = []
            for kk in range(k):
                d = pred_refs[kk][pl.ds(r0, chunk), :].astype(jnp.float32) - lab
                if valid is not None:
                    # Zero the difference for out-of-range rows (partial-block garbage).
                    d = jnp.where(row_ids < (valid - r0), d, 0.0)
                sq = d * d
                fold = jnp.sum(sq.reshape(chunk // SUBLANE, SUBLANE, LANE), axis=0)
                new_parts.append(parts[kk] + fold)
            return tuple(new_parts)

        zeros = tuple(jnp.zeros((SUBLANE, LANE), jnp.float32) for _ in range(k))
        parts = lax.fori_loop(0, n_chunks, body, zeros)
        for kk in range(k):
            acc_ref[kk] += parts[kk]

    if needs_mask:
        t = c * steps + i                     # global tile index
        full_tiles = rows // tr               # static: tiles fully in range

        @pl.when(t < full_tiles)
        def _steady():
            accumulate(None)

        @pl.when(t >= full_tiles)
        def _tail():
            valid = jnp.clip(rows - t * tr, 0, tr)
            accumulate(valid)
    else:
        accumulate(None)

    @pl.when(i == steps - 1)
    def _finalize():
        total = jnp.zeros((SUBLANE, LANE), jnp.float32)
        for kk, w in enumerate(scaled_weights):
            total = total + acc_ref[kk] * jnp.float32(w)
        out_ref[...] = total[None]


class EnsembleMSELossPallas:
    """Pallas equivalent of Ensemble_MSELoss(loss_weight)."""

    def __init__(self, loss_weight):
        self.loss_weight = dict(loss_weight)
        self.names = list(self.loss_weight.keys())
        self.weights = tuple(float(self.loss_weight[n]) for n in self.names)

    def __call__(self, pred_results, labels):
        k = len(self.names)
        preds = [pred_results[n] for n in self.names]
        n_elems = labels.size
        inv_n = 1.0 / float(n_elems)
        scaled_weights = tuple(w * inv_n for w in self.weights)

        # ---- flatten; pad ONLY if n_elems is not a multiple of 128 (rare) ----
        def to2d(x):
            flat = x.reshape(-1)
            rem = flat.size % LANE
            if rem:
                # Zeros in both labels and predictions -> d = 0 -> no SSE contribution.
                flat = jnp.pad(flat, (0, LANE - rem))
            return flat.reshape(-1, LANE)

        labels2d = to2d(labels)
        preds2d = [to2d(p) for p in preds]
        rows = labels2d.shape[0]

        # ---- tile sizing (itemsize-aware VMEM budget) ----
        if rows <= CHUNK_ROWS:
            tr = _round_up(rows, ROW_ALIGN)
            chunk = tr
        else:
            bytes_per_row = LANE * (labels.dtype.itemsize
                                    + sum(p.dtype.itemsize for p in preds))
            budget_rows = (VMEM_INPUT_BUDGET // (2 * bytes_per_row))
            budget_rows = max(CHUNK_ROWS, (budget_rows // CHUNK_ROWS) * CHUNK_ROWS)
            tr = min(MAX_TILE_ROWS, budget_rows, _round_up(rows, CHUNK_ROWS))
            chunk = CHUNK_ROWS
        num_tiles = _cdiv(rows, tr)

        # ---- megacore split: only on dual-TensorCore v7x ----
        if _is_v7x() and num_tiles >= 2:
            n_par = 2
            dim_sem = (pltpu.CORE_PARALLEL, pltpu.ARBITRARY)
        else:
            n_par = 1
            dim_sem = ("arbitrary", "arbitrary")
        steps = _cdiv(num_tiles, n_par)
        needs_mask = (n_par * steps * tr) > rows

        last_tile = num_tiles - 1

        def row_map(c, i):
            # Clamp so a tile index past the end re-reads the last valid block;
            # the kernel masks it to contribute exactly zero.
            return (jnp.minimum(c * steps + i, last_tile), 0)

        in_specs = [pl.BlockSpec((tr, LANE), row_map) for _ in range(k + 1)]
        out_spec = pl.BlockSpec((1, SUBLANE, LANE), lambda c, i: (c, 0, 0))

        in_bytes = labels.size * labels.dtype.itemsize + sum(
            p.size * p.dtype.itemsize for p in preds)
        cost = pl.CostEstimate(
            flops=4 * k * n_elems,
            transcendentals=0,
            bytes_accessed=in_bytes + n_par * SUBLANE * LANE * 4,
        )

        kernel = functools.partial(
            _ensemble_mse_kernel,
            scaled_weights=scaled_weights, tr=tr, chunk=chunk,
            rows=rows, steps=steps, needs_mask=needs_mask,
        )

        out = pl.pallas_call(
            kernel,
            out_shape=jax.ShapeDtypeStruct((n_par, SUBLANE, LANE), jnp.float32),
            grid_spec=pltpu.PrefetchScalarGridSpec(
                num_scalar_prefetch=0,
                grid=(n_par, steps),
                in_specs=in_specs,
                out_specs=out_spec,
                scratch_shapes=[pltpu.VMEM((k, SUBLANE, LANE), jnp.float32)],
            ),
            compiler_params=pltpu.CompilerParams(
                dimension_semantics=dim_sem,
                vmem_limit_bytes=VMEM_LIMIT_BYTES,
            ),
            cost_estimate=cost,
        )(*preds2d, labels2d)

        # Tiny final reduction (at most 2*8*128 elements) in the wrapper.
        return jnp.sum(out)


def _reference(loss_weight, pred_results, labels):
    total = 0.0
    lab = labels.astype(jnp.float32)
    for name, w in loss_weight.items():
        total = total + w * jnp.mean(
            (pred_results[name].astype(jnp.float32) - lab) ** 2
        )
    return total


if __name__ == "__main__":
    loss_weight = {"model_a": 1.0, "model_b": 0.5, "model_c": 2.0}
    loss_mod = EnsembleMSELossPallas(loss_weight)
    root = jax.random.PRNGKey(0)

    # Case 1: small NCHW, f32, element count divisible by 128 (clean path).
    B, C, H, W = 2, 4, 16, 16
    k1 = jax.random.fold_in(root, 1)
    k_lab, *k_preds = jax.random.split(k1, 1 + len(loss_weight))
    labels = jax.random.normal(k_lab, (B, C, H, W), dtype=jnp.float32)
    pred_results = {
        name: jax.random.normal(kp, (B, C, H, W), dtype=jnp.float32)
        for name, kp in zip(loss_weight.keys(), k_preds)
    }
    out = jax.block_until_ready(loss_mod(pred_results, labels))
    ref = jax.block_until_ready(_reference(loss_weight, pred_results, labels))
    assert jnp.allclose(out, ref, rtol=1e-5, atol=1e-5), (out, ref)

    # Case 2: odd NCHW shape (lane pad + in-kernel row mask) with bf16 predictions.
    B2, C2, H2, W2 = 2, 3, 15, 17
    k2 = jax.random.fold_in(root, 2)
    k_lab2, *k_preds2 = jax.random.split(k2, 1 + len(loss_weight))
    labels2 = jax.random.normal(k_lab2, (B2, C2, H2, W2), dtype=jnp.float32)
    pred_results2 = {
        name: jax.random.normal(kp, (B2, C2, H2, W2), dtype=jnp.bfloat16)
        for name, kp in zip(loss_weight.keys(), k_preds2)
    }
    out2 = jax.block_until_ready(loss_mod(pred_results2, labels2))
    ref2 = jax.block_until_ready(_reference(loss_weight, pred_results2, labels2))
    assert jnp.allclose(out2, ref2, rtol=1e-5, atol=1e-5), (out2, ref2)

    # Case 3: larger shape -> multiple tiles, chunked inner loop, masked tail tile.
    B3, C3, H3, W3 = 2, 8, 144, 144
    k3 = jax.random.fold_in(root, 3)
    k_lab3, *k_preds3 = jax.random.split(k3, 1 + len(loss_weight))
    labels3 = jax.random.normal(k_lab3, (B3, C3, H3, W3), dtype=jnp.float32)
    pred_results3 = {
        name: jax.random.normal(kp, (B3, C3, H3, W3), dtype=jnp.float32)
        for name, kp in zip(loss_weight.keys(), k_preds3)
    }
    out3 = jax.block_until_ready(loss_mod(pred_results3, labels3))
    ref3 = jax.block_until_ready(_reference(loss_weight, pred_results3, labels3))
    assert jnp.allclose(out3, ref3, rtol=1e-4, atol=1e-5), (out3, ref3)

    print("KERNEL_OK")
</pallas_src>

<mosaic_0001>
module attributes {stable_mosaic.version = 11 : i64} {
  func.func @_ensemble_mse_kernel(%arg0: i32, %arg1: i32, %arg2: memref<16x128xf32, #tpu.memory_space<vmem>>, %arg3: memref<16x128xf32, #tpu.memory_space<vmem>>, %arg4: memref<16x128xf32, #tpu.memory_space<vmem>>, %arg5: memref<16x128xf32, #tpu.memory_space<vmem>>, %arg6: memref<1x8x128xf32, #tpu.memory_space<vmem>>, %arg7: memref<3x8x128xf32, #tpu.memory_space<vmem>>) attributes {dimension_semantics = [#tpu.dimension_semantics<arbitrary>, #tpu.dimension_semantics<arbitrary>], iteration_bounds = array<i64: 1, 1>, scalar_prefetch = 0 : i64, scratch_operands = 1 : i64, tpu.core_type = #tpu.core_type<tc>, window_params = [{transform_indices = @transform_0, window_bounds = array<i64: 16, 128>}, {transform_indices = @transform_1, window_bounds = array<i64: 16, 128>}, {transform_indices = @transform_2, window_bounds = array<i64: 16, 128>}, {transform_indices = @transform_3, window_bounds = array<i64: 16, 128>}, {transform_indices = @transform_4, window_bounds = array<i64: 1, 8, 128>}]} {
    %c0_i32 = arith.constant 0 : i32
    %0 = arith.cmpi eq, %arg1, %c0_i32 : i32
    %1 = arith.extui %0 : i1 to i32
    %c0_i32_0 = arith.constant 0 : i32
    %2 = arith.cmpi ne, %1, %c0_i32_0 : i32
    scf.if %2 {
      %cst_28 = arith.constant 0.000000e+00 : f32
      %52 = vector.broadcast %cst_28 : f32 to vector<3x8x128xf32>
      %c0_29 = arith.constant 0 : index
      %c0_30 = arith.constant 0 : index
      %c0_31 = arith.constant 0 : index
      %53 = vector.load %arg7[%c0_29, %c0_30, %c0_31] : memref<3x8x128xf32, #tpu.memory_space<vmem>>, vector<3x8x128xf32>
      tpu.vector_store %arg7[%c0_29, %c0_30, %c0_31], %52 {strides = array<i32>} : memref<3x8x128xf32, #tpu.memory_space<vmem>>, vector<3x8x128xf32>,
    } else {
    }
    %cst = arith.constant 0.000000e+00 : f32
    %3 = vector.broadcast %cst : f32 to vector<8x128xf32>
    %cst_1 = arith.constant 0.000000e+00 : f32
    %4 = vector.broadcast %cst_1 : f32 to vector<8x128xf32>
    %cst_2 = arith.constant 0.000000e+00 : f32
    %5 = vector.broadcast %cst_2 : f32 to vector<8x128xf32>
    %c0_i32_3 = arith.constant 0 : i32
    %c16_i32 = arith.constant 16 : i32
    %6 = arith.muli %c0_i32_3, %c16_i32 : i32
    %7 = tpu.assume_multiple %6, 16 : i32
    %8 = arith.index_cast %7 : i32 to index
    %c0 = arith.constant 0 : index
    %9 = vector.load %arg5[%8, %c0] : memref<16x128xf32, #tpu.memory_space<vmem>>, vector<16x128xf32>
    %10 = arith.index_cast %7 : i32 to index
    %c0_4 = arith.constant 0 : index
    %11 = vector.load %arg2[%10, %c0_4] : memref<16x128xf32, #tpu.memory_space<vmem>>, vector<16x128xf32>
    %12 = arith.subf %11, %9 : vector<16x128xf32>
    %13 = arith.mulf %12, %12 : vector<16x128xf32>
    %14 = vector.shape_cast %13 : vector<16x128xf32> to vector<2x8x128xf32>
    %cst_5 = arith.constant dense<0.000000e+00> : vector<8x128xf32>
    %15 = vector.multi_reduction <add>, %14, %cst_5 [0] : vector<2x8x128xf32> to vector<8x128xf32>
    %16 = arith.addf %3, %15 : vector<8x128xf32>
    %17 = arith.index_cast %7 : i32 to index
    %c0_6 = arith.constant 0 : index
    %18 = vector.load %arg3[%17, %c0_6] : memref<16x128xf32, #tpu.memory_space<vmem>>, vector<16x128xf32>
    %19 = arith.subf %18, %9 : vector<16x128xf32>
    %20 = arith.mulf %19, %19 : vector<16x128xf32>
    %21 = vector.shape_cast %20 : vector<16x128xf32> to vector<2x8x128xf32>
    %cst_7 = arith.constant dense<0.000000e+00> : vector<8x128xf32>
    %22 = vector.multi_reduction <add>, %21, %cst_7 [0] : vector<2x8x128xf32> to vector<8x128xf32>
    %23 = arith.addf %4, %22 : vector<8x128xf32>
    %24 = arith.index_cast %7 : i32 to index
    %c0_8 = arith.constant 0 : index
    %25 = vector.load %arg4[%24, %c0_8] : memref<16x128xf32, #tpu.memory_space<vmem>>, vector<16x128xf32>
    %26 = arith.subf %25, %9 : vector<16x128xf32>
    %27 = arith.mulf %26, %26 : vector<16x128xf32>
    %28 = vector.shape_cast %27 : vector<16x128xf32> to vector<2x8x128xf32>
    %cst_9 = arith.constant dense<0.000000e+00> : vector<8x128xf32>
    %29 = vector.multi_reduction <add>, %28, %cst_9 [0] : vector<2x8x128xf32> to vector<8x128xf32>
    %30 = arith.addf %5, %29 : vector<8x128xf32>
    %c1_i32 = arith.constant 1 : i32
    %c0_10 = arith.constant 0 : index
    %c0_11 = arith.constant 0 : index
    %c0_12 = arith.constant 0 : index
    %31 = vector.load %arg7[%c0_10, %c0_11, %c0_12] : memref<3x8x128xf32, #tpu.memory_space<vmem>>, vector<1x8x128xf32>
    %32 = vector.shape_cast %31 : vector<1x8x128xf32> to vector<8x128xf32>
    %33 = arith.addf %32, %16 : vector<8x128xf32>
    %c0_13 = arith.constant 0 : index
    %c0_14 = arith.constant 0 : index
    %c0_15 = arith.constant 0 : index
    %34 = vector.load %arg7[%c0_13, %c0_14, %c0_15] : memref<3x8x128xf32, #tpu.memory_space<vmem>>, vector<1x8x128xf32>
    %35 = vector.shape_cast %34 : vector<1x8x128xf32> to vector<8x128xf32>
    %36 = vector.shape_cast %33 : vector<8x128xf32> to vector<1x8x128xf32>
    tpu.vector_store %arg7[%c0_13, %c0_14, %c0_15], %36 {strides = array<i32>} : memref<3x8x128xf32, #tpu.memory_space<vmem>>, vector<1x8x128xf32>,
    %c1 = arith.constant 1 : index
    %c0_16 = arith.constant 0 : index
    %c0_17 = arith.constant 0 : index
    %37 = vector.load %arg7[%c1, %c0_16, %c0_17] : memref<3x8x128xf32, #tpu.memory_space<vmem>>, vector<1x8x128xf32>
    %38 = vector.shape_cast %37 : vector<1x8x128xf32> to vector<8x128xf32>
    %39 = arith.addf %38, %23 : vector<8x128xf32>
    %c1_18 = arith.constant 1 : index
    %c0_19 = arith.constant 0 : index
    %c0_20 = arith.constant 0 : index
    %40 = vector.load %arg7[%c1_18, %c0_19, %c0_20] : memref<3x8x128xf32, #tpu.memory_space<vmem>>, vector<1x8x128xf32>
    %41 = vector.shape_cast %40 : vector<1x8x128xf32> to vector<8x128xf32>
    %42 = vector.shape_cast %39 : vector<8x128xf32> to vector<1x8x128xf32>
    tpu.vector_store %arg7[%c1_18, %c0_19, %c0_20], %42 {strides = array<i32>} : memref<3x8x128xf32, #tpu.memory_space<vmem>>, vector<1x8x128xf32>,
    %c2 = arith.constant 2 : index
    %c0_21 = arith.constant 0 : index
    %c0_22 = arith.constant 0 : index
    %43 = vector.load %arg7[%c2, %c0_21, %c0_22] : memref<3x8x128xf32, #tpu.memory_space<vmem>>, vector<1x8x128xf32>
    %44 = vector.shape_cast %43 : vector<1x8x128xf32> to vector<8x128xf32>
    %45 = arith.addf %44, %30 : vector<8x128xf32>
    %c2_23 = arith.constant 2 : index
    %c0_24 = arith.constant 0 : index
    %c0_25 = arith.constant 0 : index
    %46 = vector.load %arg7[%c2_23, %c0_24, %c0_25] : memref<3x8x128xf32, #tpu.memory_space<vmem>>, vector<1x8x128xf32>
    %47 = vector.shape_cast %46 : vector<1x8x128xf32> to vector<8x128xf32>
    %48 = vector.shape_cast %45 : vector<8x128xf32> to vector<1x8x128xf32>
    tpu.vector_store %arg7[%c2_23, %c0_24, %c0_25], %48 {strides = array<i32>} : memref<3x8x128xf32, #tpu.memory_space<vmem>>, vector<1x8x128xf32>,
    %c0_i32_26 = arith.constant 0 : i32
    %49 = arith.cmpi eq, %arg1, %c0_i32_26 : i32
    %50 = arith.extui %49 : i1 to i32
    %c0_i32_27 = arith.constant 0 : i32
    %51 = arith.cmpi ne, %50, %c0_i32_27 : i32
    scf.if %51 {
      %cst_28 = arith.constant 0.000000e+00 : f32
      %52 = vector.broadcast %cst_28 : f32 to vector<8x128xf32>
      %c0_29 = arith.constant 0 : index
      %c0_30 = arith.constant 0 : index
      %c0_31 = arith.constant 0 : index
      %53 = vector.load %arg7[%c0_29, %c0_30, %c0_31] : memref<3x8x128xf32, #tpu.memory_space<vmem>>, vector<1x8x128xf32>
      %54 = vector.shape_cast %53 : vector<1x8x128xf32> to vector<8x128xf32>
      %cst_32 = arith.constant 4.8828125E-4 : f32
      %55 = vector.broadcast %cst_32 : f32 to vector<8x128xf32>
      %56 = arith.mulf %54, %55 : vector<8x128xf32>
      %57 = arith.addf %52, %56 : vector<8x128xf32>
      %c1_33 = arith.constant 1 : index
      %c0_34 = arith.constant 0 : index
      %c0_35 = arith.constant 0 : index
      %58 = vector.load %arg7[%c1_33, %c0_34, %c0_35] : memref<3x8x128xf32, #tpu.memory_space<vmem>>, vector<1x8x128xf32>
      %59 = vector.shape_cast %58 : vector<1x8x128xf32> to vector<8x128xf32>
      %cst_36 = arith.constant 2.44140625E-4 : f32
      %60 = vector.broadcast %cst_36 : f32 to vector<8x128xf32>
      %61 = arith.mulf %59, %60 : vector<8x128xf32>
      %62 = arith.addf %57, %61 : vector<8x128xf32>
      %c2_37 = arith.constant 2 : index
      %c0_38 = arith.constant 0 : index
      %c0_39 = arith.constant 0 : index
      %63 = vector.load %arg7[%c2_37, %c0_38, %c0_39] : memref<3x8x128xf32, #tpu.memory_space<vmem>>, vector<1x8x128xf32>
      %64 = vector.shape_cast %63 : vector<1x8x128xf32> to vector<8x128xf32>
      %cst_40 = arith.constant 9.765625E-4 : f32
      %65 = vector.broadcast %cst_40 : f32 to vector<8x128xf32>
      %66 = arith.mulf %64, %65 : vector<8x128xf32>
      %67 = arith.addf %62, %66 : vector<8x128xf32>
      %68 = vector.shape_cast %67 : vector<8x128xf32> to vector<1x8x128xf32>
      %c0_41 = arith.constant 0 : index
      %c0_42 = arith.constant 0 : index
      %c0_43 = arith.constant 0 : index
      %69 = vector.load %arg6[%c0_41, %c0_42, %c0_43] : memref<1x8x128xf32, #tpu.memory_space<vmem>>, vector<1x8x128xf32>
      tpu.vector_store %arg6[%c0_41, %c0_42, %c0_43], %68 {strides = array<i32>} : memref<1x8x128xf32, #tpu.memory_space<vmem>>, vector<1x8x128xf32>,
    } else {
    }
    return
  }
  func.func @transform_0(%arg0: i32, %arg1: i32) -> (i32, i32) {
    %c1_i32 = arith.constant 1 : i32
    %0 = arith.muli %arg0, %c1_i32 : i32
    %1 = arith.addi %0, %arg1 : i32
    %c0_i32 = arith.constant 0 : i32
    %2 = arith.minsi %1, %c0_i32 : i32
    %c0_i32_0 = arith.constant 0 : i32
    %c0_i32_1 = arith.constant 0 : i32
    return %2, %c0_i32_0 : i32, i32
  }
  func.func @transform_1(%arg0: i32, %arg1: i32) -> (i32, i32) {
    %c1_i32 = arith.constant 1 : i32
    %0 = arith.muli %arg0, %c1_i32 : i32
    %1 = arith.addi %0, %arg1 : i32
    %c0_i32 = arith.constant 0 : i32
    %2 = arith.minsi %1, %c0_i32 : i32
    %c0_i32_0 = arith.constant 0 : i32
    %c0_i32_1 = arith.constant 0 : i32
    return %2, %c0_i32_0 : i32, i32
  }
  func.func @transform_2(%arg0: i32, %arg1: i32) -> (i32, i32) {
    %c1_i32 = arith.constant 1 : i32
    %0 = arith.muli %arg0, %c1_i32 : i32
    %1 = arith.addi %0, %arg1 : i32
    %c0_i32 = arith.constant 0 : i32
    %2 = arith.minsi %1, %c0_i32 : i32
    %c0_i32_0 = arith.constant 0 : i32
    %c0_i32_1 = arith.constant 0 : i32
    return %2, %c0_i32_0 : i32, i32
  }
  func.func @transform_3(%arg0: i32, %arg1: i32) -> (i32, i32) {
    %c1_i32 = arith.constant 1 : i32
    %0 = arith.muli %arg0, %c1_i32 : i32
    %1 = arith.addi %0, %arg1 : i32
    %c0_i32 = arith.constant 0 : i32
    %2 = arith.minsi %1, %c0_i32 : i32
    %c0_i32_0 = arith.constant 0 : i32
    %c0_i32_1 = arith.constant 0 : i32
    return %2, %c0_i32_0 : i32, i32
  }
  func.func @transform_4(%arg0: i32, %arg1: i32) -> (i32, i32, i32) {
    %c0_i32 = arith.constant 0 : i32
    %c0_i32_0 = arith.constant 0 : i32
    %c0_i32_1 = arith.constant 0 : i32
    return %arg0, %c0_i32, %c0_i32_0 : i32, i32, i32
  }
}

</mosaic_0001>

<bundles_post_ra>
// kernel: tpu_custom_call.1
= control target key start
LH: loop header
LB: loop body
LE: loop exit
PB: predicated region body
PF: predicated region fallthrough
CT: control target
= control target key end

     0   :  { %9 = vsyncpa [#allocation4], 0  ;;  %s369_s0 = inlined_call_operand.hbm [shape: f32[16,128], index: 0, kind: input, shape index: {}]   ;;  %s370_s1 = inlined_call_operand.hbm [shape: f32[16,128], index: 1, kind: input, shape index: {}]   ;;  %s371_s2 = inlined_call_operand.hbm [shape: f32[16,128], index: 2, kind: input, shape index: {}]   ;;  %s372_s3 = inlined_call_operand.hbm [shape: f32[16,128], index: 3, kind: input, shape index: {}]   ;;  %s373_s4 = inlined_call_operand.hbm [shape: f32[1,8,128], index: 4, kind: output, shape index: {}]  }
   0x1   :  { %10 = vsyncpa [#allocation7], 0 }
   0x2   :  { %11 = vsyncpa [#allocation10], 0 }
   0x3   :  { %12 = vsyncpa [#allocation5], 0  ;;  %s310_s15 = smov [#allocation6]   ;;  %s311_s17 = smov [#allocation3]  }
   0x4   :  { %s42_s16 = sshll.u32 %s310_s15, 4  ;;  %s24_s18 = sshll.u32 %s311_s17, 4  ;;  %s43_s16 = int_to_ptr.vmem [resolvable:$true] %s42_s16  ;;  %s25_s18 = int_to_ptr.vmem [resolvable:$true] %s24_s18 }
   0x5   :  { %s210_s19 = scalar_lea.vmem %s43_s16, 256  ;;  %p215_p1 = scmp.lt.s32.totalorder %s43_s16, %s43_s16 }
   0x6   :  { %p211_p0 = scmp.ne.s32.totalorder %s43_s16, %s210_s19  ;;  %p216_p2 = scmp.lt.s32.totalorder %s210_s19, %s210_s19 }
   0x8   :  { %p217_p3 = por %p216_p2, %p215_p1 }
   0xa   :  { %p218_p4 = pnand %p217_p3, %p211_p0 }
   0xc   :  { %221 = shalt.err (!%p218_p4)
}
   0xd   :  { %s312_s20 = smov 128   ;;  %s313_s21 = smov 8  }
   0xe   :  { %48 = dma.hbm_to_vmem [thread:$0]  %s370_s1, 256, %s43_s16, [#allocation7], %s312_s20, %s312_s20, %s313_s21  }
   0xf   :  { %s230_s24 = scalar_lea.vmem %s25_s18, 256  ;;  %p235_p6 = scmp.lt.s32.totalorder %s25_s18, %s25_s18 }
  0x10   :  { %p231_p5 = scmp.ne.s32.totalorder %s25_s18, %s230_s24  ;;  %p236_p7 = scmp.lt.s32.totalorder %s230_s24, %s230_s24 }
  0x12   :  { %p237_p8 = por %p236_p7, %p235_p6 }
  0x14   :  { %p238_p9 = pnand %p237_p8, %p231_p5 }
  0x16   :  { %241 = shalt.err (!%p238_p9)
}
  0x17   :  { %30 = dma.hbm_to_vmem [thread:$0]  %s369_s0, 256, %s25_s18, [#allocation4], %s312_s20, %s312_s20, %s313_s21  }
  0x18   :  { %s314_s27 = smov [#allocation8]   ;;  %s315_s29 = smov [#allocation9]  }
  0x19   :  { %s60_s28 = sshll.u32 %s314_s27, 4  ;;  %s78_s30 = sshll.u32 %s315_s29, 4  ;;  %s61_s28 = int_to_ptr.vmem [resolvable:$true] %s60_s28  ;;  %s79_s30 = int_to_ptr.vmem [resolvable:$true] %s78_s30 }
  0x1a   :  { %s250_s1 = scalar_lea.vmem %s61_s28, 256  ;;  %p255_p11 = scmp.lt.s32.totalorder %s61_s28, %s61_s28 }
  0x1b   :  { %p251_p10 = scmp.ne.s32.totalorder %s61_s28, %s250_s1  ;;  %p256_p12 = scmp.lt.s32.totalorder %s250_s1, %s250_s1 }
  0x1d   :  { %p257_p13 = por %p256_p12, %p255_p11 }
  0x1f   :  { %p258_p0 = pnand %p257_p13, %p251_p10 }
  0x21   :  { %261 = shalt.err (!%p258_p0)
}
  0x22   :  { %66 = dma.hbm_to_vmem [thread:$0]  %s371_s2, 256, %s61_s28, [#allocation7], %s312_s20, %s312_s20, %s313_s21  }
  0x23   :  { %s270_s0 = scalar_lea.vmem %s79_s30, 256  ;;  %p275_p2 = scmp.lt.s32.totalorder %s79_s30, %s79_s30 }
  0x24   :  { %p271_p1 = scmp.ne.s32.totalorder %s79_s30, %s270_s0  ;;  %p276_p3 = scmp.lt.s32.totalorder %s270_s0, %s270_s0 }
  0x26   :  { %p277_p4 = por %p276_p3, %p275_p2 }
  0x28   :  { %p278_p5 = pnand %p277_p4, %p271_p1 }
  0x2a   :  { %281 = shalt.err (!%p278_p5)
}
  0x2b   :  { %84 = dma.hbm_to_vmem [thread:$0]  %s372_s3, 256, %s79_s30, [#allocation10], %s312_s20, %s312_s20, %s313_s21  }
  0x2c   :  { %302 = dma.done.wait [#allocation4], 256  }
  0x2d   :  { %303 = vsyncadd [#allocation4], 4294967040 }
  0x2e   :  { %304 = dma.done.wait [#allocation7], 512  }
  0x2f   :  { %305 = vsyncadd [#allocation7], 4294966784 }
  0x30   :  { %306 = dma.done.wait [#allocation10], 256  }
  0x31   :  { %307 = vsyncadd [#allocation10], 4294967040  ;;  %v120_v0 = vld [vmem:[#allocation9] sm:$0xff]  ;;  %v121_v1 = vld [vmem:[#allocation9 + $0x8] sm:$0xff]  ;;  %s316_s2 = smov [#allocation11]  }
  0x32   :  { %v122_v2 = vld [vmem:[#allocation3] sm:$0xff]  ;;  %v123_v3 = vld [vmem:[#allocation3 + $0x8] sm:$0xff]  ;;  %v130_v5 = vld [vmem:[#allocation6] sm:$0xff]  ;;  %s176_s3 = sshll.u32 %s316_s2, 4  ;;  %s177_s3 = int_to_ptr.vmem [resolvable:$true] %s176_s3 }
  0x33   :  { %v124_v4 = vsub.f32 %v122_v2, %v120_v0  ;;  %v131_v6 = vld [vmem:[#allocation6 + $0x8] sm:$0xff]  ;;  %v125_v7 = vsub.f32 %v123_v3, %v121_v1  ;;  %v132_v8 = vsub.f32 %v130_v5, %v120_v0  ;;  %v138_v10 = vld [vmem:[#allocation8] sm:$0xff]  ;;  %v139_v11 = vld [vmem:[#allocation8 + $0x8] sm:$0xff]  ;;  %s282_s9 = scalar_lea.vmem %s177_s3, 128  ;;  %p287_p7 = scmp.lt.s32.totalorder %s177_s3, %s177_s3 }
  0x34   :  { %v133_v9 = vsub.f32 %v131_v6, %v121_v1  ;;  %v140_v13 = vsub.f32 %v138_v10, %v120_v0  ;;  %v141_v14 = vsub.f32 %v139_v11, %v121_v1  ;;  %p283_p6 = scmp.ne.s32.totalorder %s177_s3, %s282_s9  ;;  %p288_p8 = scmp.lt.s32.totalorder %s282_s9, %s282_s9 }
  0x35   :  { %v126_v12 = vmul.f32 %v124_v4, %v124_v4  ;;  %v127_v15 = vmul.f32 %v125_v7, %v125_v7  ;;  %v134_v16 = vmul.f32 %v132_v8, %v132_v8 }
  0x36   :  { %v135_v17 = vmul.f32 %v133_v9, %v133_v9  ;;  %v142_v18 = vmul.f32 %v140_v13, %v140_v13  ;;  %v143_v19 = vmul.f32 %v141_v14, %v141_v14  ;;  %p289_p9 = por %p288_p8, %p287_p7 }
  0x37   :  { %v128_v20 = vadd.f32 %v127_v15, %v126_v12 }
  0x38   :  { %v136_v21 = vadd.f32 %v135_v17, %v134_v16  ;;  %v144_v22 = vadd.f32 %v143_v19, %v142_v18  ;;  %p290_p10 = pnand %p289_p9, %p283_p6 }
  0x39   :  { %v161_v23 = vmul.f32 0.00048828125, %v128_v20 }
  0x3a   :  { %v164_v24 = vmul.f32 0.00024414063, %v136_v21  ;;  %v167_v25 = vmul.f32 0.0009765625, %v144_v22 }
  0x3c   :  { %v165_v26 = vadd.f32 %v164_v24, %v161_v23 }
  0x3e   :  { %v168_v27 = vadd.f32 %v167_v25, %v165_v26 }
  0x40   :  { %169 = vst [vmem:[#allocation11] sm:$0xff] %v168_v27 }
  0x41   :  { %293 = shalt.err (!%p290_p10)
}
  0x42   :  { %179 = dma.vmem_to_hbm [thread:$0]  %s177_s3, 128, %s373_s4, [#allocation5]  }
  0x43   :  { %308 = dma.done.wait [#allocation5], 128  }
  0x44   :  { %309 = vsyncadd [#allocation5], 4294967168 }
  0x45   :  { %183 = vsyncpa [#allocation4], 1 }
  0x46   :  { %184 = vsyncpa [#allocation7], 1 }
  0x47   :  { %185 = vsyncpa [#allocation10], 1 }
  0x48   :  { %186 = vsyncpa [#allocation5], 1 }

</bundles_post_ra>
